<compile_context>
chip_gen: v7x
topology: tpu7x:2x2x1
jax: 0.10.0
libtpu: 0.0.40
codegen_flags: <defaults>
</compile_context>

<pallas_src>
import functools

import jax
import jax.numpy as jnp
from jax import lax
from jax.experimental import pallas as pl
from jax.experimental.pallas import tpu as pltpu


def _round_up(x, m):
    return ((x + m - 1) // m) * m


def logreg_kernel(x_ref, w_ref, b_ref, o_ref):
    # x_ref: (TB, In)   w_ref: (Out_pad, In)   b_ref: (1, Out_pad)
    # o_ref: (TB, Out_pad)
    x = x_ref[...]
    w = w_ref[...]
    b = b_ref[...]
    # Linear layer on the MXU: x @ w.T done natively via dot_general (no
    # materialized transpose), f32 accumulation.
    logits = lax.dot_general(
        x, w,
        dimension_numbers=(((1,), (1,)), ((), ())),
        preferred_element_type=jnp.float32,
    ) + b
    # Numerically-stable LogSoftmax along the feature axis. Padded columns
    # carry a -1e30 bias -> exp underflows to 0, so the LSE over the real
    # Out features is unchanged.
    m = jnp.max(logits, axis=1, keepdims=True)
    shifted = logits - m
    lse = jnp.log(jnp.sum(jnp.exp(shifted), axis=1, keepdims=True))
    o_ref[...] = (shifted - lse).astype(o_ref.dtype)


@functools.partial(jax.jit, static_argnames=("block_b",))
def logistic_regression1(x, weight, bias, *, block_b=256):
    """x: (B, In) f32; weight: (Out, In) f32 (PyTorch layout); bias: (Out,) f32."""
    B, In = x.shape
    Out = weight.shape[0]

    # --- layout prep (outside the hot loop) -------------------------------
    # Lane-dense output: pad Out up to a multiple of 128 so stores are full
    # vst (not masked vst.msk). Padded weight rows are zero, padded bias is
    # -1e30 so those columns never influence the softmax.
    Out_pad = max(128, _round_up(Out, 128))
    w_pad = jnp.zeros((Out_pad, In), dtype=weight.dtype).at[:Out, :].set(weight)
    b_pad = jnp.full((1, Out_pad), -1e30, dtype=bias.dtype).at[0, :Out].set(bias)

    # Batch tiling: never tile In or Out (single-pass log-softmax needs the
    # whole feature row); tile B for pipelining / megacore sharding.
    if B >= block_b:
        TB = block_b
    else:
        TB = _round_up(B, 8)
    B_pad = _round_up(B, TB)
    x_pad = x if B_pad == B else jnp.zeros((B_pad, In), dtype=x.dtype).at[:B, :].set(x)

    grid_b = B_pad // TB

    out_padded = pl.pallas_call(
        logreg_kernel,
        out_shape=jax.ShapeDtypeStruct((B_pad, Out_pad), jnp.float32),
        grid_spec=pltpu.PrefetchScalarGridSpec(
            num_scalar_prefetch=0,
            grid=(grid_b,),
            in_specs=[
                pl.BlockSpec((TB, In), lambda i: (i, 0)),        # x tile
                pl.BlockSpec((Out_pad, In), lambda i: (0, 0)),   # weight, VMEM-resident
                pl.BlockSpec((1, Out_pad), lambda i: (0, 0)),    # bias, VMEM-resident
            ],
            out_specs=pl.BlockSpec((TB, Out_pad), lambda i: (i, 0)),
        ),
        compiler_params=pltpu.CompilerParams(
            # Batch tiles are independent -> shard across TensorCores (v7x).
            dimension_semantics=("parallel",),
            # Generous ceiling with headroom; per-tile footprint is
            # ~2*(TB*In + TB*Out_pad)*4 + Out_pad*In*4 bytes, far below this.
            vmem_limit_bytes=32 * 1024 * 1024,
        ),
    )(x_pad, w_pad, b_pad)

    # Slice back to the real problem size.
    return out_padded[:B, :Out]


if __name__ == "__main__":
    # Small shapes consistent with the module: inputSize=32, outputSize=16, batch=8.
    B, inputSize, outputSize = 8, 32, 16

    key = jax.random.PRNGKey(0)
    kx, kw, kb = jax.random.split(key, 3)

    x = jax.random.normal(kx, (B, inputSize), dtype=jnp.float32)
    # Deterministic param init (mimics nn.Linear uniform(-1/sqrt(in), 1/sqrt(in))).
    bound = 1.0 / (inputSize ** 0.5)
    weight = jax.random.uniform(kw, (outputSize, inputSize),
                                dtype=jnp.float32, minval=-bound, maxval=bound)
    bias = jax.random.uniform(kb, (outputSize,),
                              dtype=jnp.float32, minval=-bound, maxval=bound)

    out = logistic_regression1(x, weight, bias)
    jax.block_until_ready(out)

    # Pure-JAX reference check.
    logits_ref = x @ weight.T + bias
    ref = jax.nn.log_softmax(logits_ref, axis=1)
    assert out.shape == (B, outputSize), f"bad shape {out.shape}"
    assert jnp.allclose(out, ref, atol=1e-5, rtol=1e-5), "mismatch vs reference"

    print("KERNEL_OK")
</pallas_src>

<mosaic_0001>
module attributes {stable_mosaic.version = 11 : i64} {
  func.func @logreg_kernel(%arg0: i32, %arg1: memref<8x32xf32, #tpu.memory_space<vmem>>, %arg2: memref<128x32xf32, #tpu.memory_space<vmem>>, %arg3: memref<1x128xf32, #tpu.memory_space<vmem>>, %arg4: memref<8x128xf32, #tpu.memory_space<vmem>>) attributes {dimension_semantics = [#tpu.dimension_semantics<parallel>], iteration_bounds = array<i64: 1>, scalar_prefetch = 0 : i64, scratch_operands = 0 : i64, tpu.core_type = #tpu.core_type<tc>, window_params = [{transform_indices = @transform_0, window_bounds = array<i64: 8, 32>}, {pipeline_mode = #tpu.pipeline_mode<synchronous>, transform_indices = @transform_1, window_bounds = array<i64: 128, 32>}, {pipeline_mode = #tpu.pipeline_mode<synchronous>, transform_indices = @transform_2, window_bounds = array<i64: 1, 128>}, {transform_indices = @transform_3, window_bounds = array<i64: 8, 128>}]} {
    %c0 = arith.constant 0 : index
    %c0_0 = arith.constant 0 : index
    %0 = vector.load %arg1[%c0, %c0_0] : memref<8x32xf32, #tpu.memory_space<vmem>>, vector<8x32xf32>
    %c0_1 = arith.constant 0 : index
    %c0_2 = arith.constant 0 : index
    %1 = vector.load %arg2[%c0_1, %c0_2] : memref<128x32xf32, #tpu.memory_space<vmem>>, vector<128x32xf32>
    %c0_3 = arith.constant 0 : index
    %c0_4 = arith.constant 0 : index
    %2 = vector.load %arg3[%c0_3, %c0_4] : memref<1x128xf32, #tpu.memory_space<vmem>>, vector<1x128xf32>
    %cst = arith.constant dense<0.000000e+00> : vector<8x128xf32>
    %3 = tpu.matmul %0, %1, %cst {dimension_numbers = #tpu.dot_dimension_numbers<[1], [1], [0], [0], [0, 0, 1, 0], [], []>} : vector<8x32xf32>, vector<128x32xf32>, vector<8x128xf32> -> vector<8x128xf32>
    %4 = vector.broadcast %2 : vector<1x128xf32> to vector<8x128xf32>
    %5 = arith.addf %3, %4 : vector<8x128xf32>
    %cst_5 = arith.constant dense<0xFF800000> : vector<8xf32>
    %6 = vector.multi_reduction <maximumf>, %5, %cst_5 [1] : vector<8x128xf32> to vector<8xf32>
    %7 = vector.shape_cast %6 : vector<8xf32> to vector<8x1xf32>
    %8 = vector.broadcast %7 : vector<8x1xf32> to vector<8x128xf32>
    %9 = arith.subf %5, %8 : vector<8x128xf32>
    %10 = math.exp %9 : vector<8x128xf32>
    %cst_6 = arith.constant dense<0.000000e+00> : vector<8xf32>
    %11 = vector.multi_reduction <add>, %10, %cst_6 [1] : vector<8x128xf32> to vector<8xf32>
    %12 = vector.shape_cast %11 : vector<8xf32> to vector<8x1xf32>
    %13 = math.log %12 : vector<8x1xf32>
    %14 = vector.broadcast %13 : vector<8x1xf32> to vector<8x128xf32>
    %15 = arith.subf %9, %14 : vector<8x128xf32>
    %c0_7 = arith.constant 0 : index
    %c0_8 = arith.constant 0 : index
    %16 = vector.load %arg4[%c0_7, %c0_8] : memref<8x128xf32, #tpu.memory_space<vmem>>, vector<8x128xf32>
    tpu.vector_store %arg4[%c0_7, %c0_8], %15 {strides = array<i32>} : memref<8x128xf32, #tpu.memory_space<vmem>>, vector<8x128xf32>,
    return
  }
  func.func @transform_0(%arg0: i32) -> (i32, i32) {
    %c0_i32 = arith.constant 0 : i32
    %c0_i32_0 = arith.constant 0 : i32
    return %arg0, %c0_i32 : i32, i32
  }
  func.func @transform_1(%arg0: i32) -> (i32, i32) {
    %c0_i32 = arith.constant 0 : i32
    %c0_i32_0 = arith.constant 0 : i32
    %c0_i32_1 = arith.constant 0 : i32
    return %c0_i32, %c0_i32_0 : i32, i32
  }
  func.func @transform_2(%arg0: i32) -> (i32, i32) {
    %c0_i32 = arith.constant 0 : i32
    %c0_i32_0 = arith.constant 0 : i32
    %c0_i32_1 = arith.constant 0 : i32
    return %c0_i32, %c0_i32_0 : i32, i32
  }
  func.func @transform_3(%arg0: i32) -> (i32, i32) {
    %c0_i32 = arith.constant 0 : i32
    %c0_i32_0 = arith.constant 0 : i32
    return %arg0, %c0_i32 : i32, i32
  }
}

</mosaic_0001>

<bundles_post_ra>
// kernel: logistic_regression1.1
= control target key start
LH: loop header
LB: loop body
LE: loop exit
PB: predicated region body
PF: predicated region fallthrough
CT: control target
= control target key end

     0   :  { %vm39_vm0 = vcmask 261120   ;;  %v320_v2 = vmov 0.0|0.0   ;;  %vm321_vm2 = vmmov 0   ;;  %v322_v5 = vmov 0.0   ;;  %s433_s0 = inlined_call_operand.vmem [shape: f32[8,32], index: 0, kind: input, shape index: {}]   ;;  %s434_s1 = inlined_call_operand.vmem [shape: f32[128,32], index: 1, kind: input, shape index: {}]   ;;  %s435_s2 = inlined_call_operand.vmem [shape: f32[1,128], index: 2, kind: input, shape index: {}]   ;;  %s436_s3 = inlined_call_operand.hbm [shape: f32[8,128], index: 3, kind: output, shape index: {}]  }
   0x1   :  { %v16_v0 = vld [vmem:[%s434_s1] sm:$0xff]  ;;  %v17_v1 = vld [vmem:[%s434_s1 + $0x8] sm:$0xff]  ;;  %256 = vmatprep.subr.bf16.mxu0 %v320_v2  ;;  %vm352_vm1 = vmpackc.low %vm39_vm0, %vm39_vm0  ;;  %253 = vmatprep.mubr.msk.f32.mxu0 %vm321_vm2, %v322_v5 }
   0x2   :  { %v257_v3 = vpack.c.bf16 %v17_v1, %v16_v0  ;;  %v18_v6 = vld [vmem:[%s434_s1 + $0x10] sm:$0xff]  ;;  %v19_v7 = vld [vmem:[%s434_s1 + $0x18] sm:$0xff] }
   0x4   :  { %259 = vmatpush3.bf16.xpose.msk.msra.mxu0 %vm352_vm1, %v257_v3 }
   0x5   :  { %260 = vmatprep.subr.bf16.mxu0 %v320_v2 }
   0x6   :  { %8 = vsyncpa [#allocation3], 0  ;;  %v261_v8 = vpack.c.bf16 %v19_v7, %v18_v6  ;;  %v20_v9 = vld [vmem:[%s434_s1 + $0x20] sm:$0xff]  ;;  %v21_v10 = vld [vmem:[%s434_s1 + $0x28] sm:$0xff] }
   0x7   :  { %v265_v11 = vpack.c.bf16 %v21_v10, %v20_v9  ;;  %v22_v12 = vld [vmem:[%s434_s1 + $0x30] sm:$0xff]  ;;  %v23_v13 = vld [vmem:[%s434_s1 + $0x38] sm:$0xff]  ;;  %v24_v15 = vld [vmem:[%s434_s1 + $0x40] sm:$0xff] }
   0x8   :  { %v269_v14 = vpack.c.bf16 %v23_v13, %v22_v12  ;;  %v25_v16 = vld [vmem:[%s434_s1 + $0x48] sm:$0xff]  ;;  %v26_v18 = vld [vmem:[%s434_s1 + $0x50] sm:$0xff]  ;;  %v27_v19 = vld [vmem:[%s434_s1 + $0x58] sm:$0xff] }
   0x9   :  { %v273_v17 = vpack.c.bf16 %v25_v16, %v24_v15  ;;  %v277_v20 = vpack.c.bf16 %v27_v19, %v26_v18  ;;  %v28_v21 = vld [vmem:[%s434_s1 + $0x60] sm:$0xff]  ;;  %v29_v22 = vld [vmem:[%s434_s1 + $0x68] sm:$0xff]  ;;  %v30_v24 = vld [vmem:[%s434_s1 + $0x70] sm:$0xff] }
   0xa   :  { %v281_v23 = vpack.c.bf16 %v29_v22, %v28_v21  ;;  %v31_v25 = vld [vmem:[%s434_s1 + $0x78] sm:$0xff]  ;;  %v15_v27 = vld [vmem:[%s433_s0] sm:$0xff]  ;;  %s323_s0 = smov [#allocation2]  }
   0xb   :  { %v285_v26 = vpack.c.bf16 %v31_v25, %v30_v24  ;;  %v186_v28 = vld [vmem:[%s435_s2] ss:$0 sm:$0xff]  ;;  %s178_s1 = sshll.u32 %s323_s0, 4  ;;  %s179_s1 = int_to_ptr.vmem [resolvable:$true] %s178_s1 }
   0xc   :  { %263 = vmatpush3.bf16.xpose.msk.msra.mxu0 %vm352_vm1, %v261_v8  ;;  %s296_s2 = scalar_lea.vmem %s179_s1, 128  ;;  %p301_p1 = scmp.lt.s32.totalorder %s179_s1, %s179_s1 }
   0xd   :  { %264 = vmatprep.subr.bf16.mxu0 %v320_v2  ;;  %p297_p0 = scmp.ne.s32.totalorder %s179_s1, %s296_s2  ;;  %p302_p2 = scmp.lt.s32.totalorder %s296_s2, %s296_s2 }
   0xf   :  { %p303_p3 = por %p302_p2, %p301_p1 }
  0x11   :  { %p304_p4 = pnand %p303_p3, %p297_p0 }
  0x14   :  { %267 = vmatpush3.bf16.xpose.msk.msra.mxu0 %vm352_vm1, %v265_v11 }
  0x15   :  { %268 = vmatprep.subr.bf16.mxu0 %v320_v2 }
  0x1c   :  { %271 = vmatpush3.bf16.xpose.msk.msra.mxu0 %vm352_vm1, %v269_v14 }
  0x1d   :  { %272 = vmatprep.subr.bf16.mxu0 %v320_v2 }
  0x24   :  { %275 = vmatpush3.bf16.xpose.msk.msra.mxu0 %vm352_vm1, %v273_v17 }
  0x25   :  { %276 = vmatprep.subr.bf16.mxu0 %v320_v2 }
  0x2c   :  { %279 = vmatpush3.bf16.xpose.msk.msra.mxu0 %vm352_vm1, %v277_v20 }
  0x2d   :  { %280 = vmatprep.subr.bf16.mxu0 %v320_v2 }
  0x34   :  { %283 = vmatpush3.bf16.xpose.msk.msra.mxu0 %vm352_vm1, %v281_v23 }
  0x35   :  { %284 = vmatprep.subr.bf16.mxu0 %v320_v2 }
  0x3c   :  { %287 = vmatpush3.bf16.xpose.msk.msra.mxu0 %vm352_vm1, %v285_v26 }
  0x43   :  { %254 = vmatmul.mubr.msk.f32.vlgmr.msra.gmra.mrb[0].mxu0 %vm39_vm0, %v15_v27 }
 0x116   :  { %v157_v29 = vpop.f32.mrb[0].mxu0 }
 0x117   :  { %v158_v30 = vadd.f32 %v186_v28, %v157_v29  ;;  %v255_v31 = vpop.f32.mrb[1].mxu0 }
 0x119   :  { %161 = vmax.xlane.f32.xlu0 %v158_v30 }
 0x1a6   :  { %v162_v32 = vpop.xlane.xlu0 %161 }
 0x1a7   :  { %v163_v33 = vsub.f32 %v158_v30, %v162_v32 }
 0x1a9   :  { %v164_v34 = vmul.f32 1.442695, %v163_v33 }
 0x1ab   :  { %292 = vpow2.f32 %v164_v34 }
 0x1b5   :  { %v293_v35 = vpop.eup %292 }
 0x1b6   :  { %166 = vadd.xlane.f32.xlu0 %v293_v35 }
 0x243   :  { %v167_v36 = vpop.xlane.xlu0 %166 }
 0x244   :  { %294 = vlog2.f32 %v167_v36 }
 0x24e   :  { %v295_v37 = vpop.eup %294 }
 0x24f   :  { %v169_v38 = vmul.f32 0.6931472, %v295_v37 }
 0x251   :  { %v170_v39 = vsub.f32 %v163_v33, %v169_v38 }
 0x253   :  { %171 = vst [vmem:[#allocation2] sm:$0xff] %v170_v39 }
 0x254   :  { %307 = shalt.err (!%p304_p4)
}
 0x255   :  { %s308_s23 = scalar_lea.hbm %s436_s3, 128 }
 0x256   :  { %p309_p5 = scmp.ne.s32.totalorder %s436_s3, %s308_s23  ;;  %p312_p6 = scmp.lt.u32.totalorder %s308_s23, %s436_s3 }
 0x258   :  { %p314_p7 = pnand %p312_p6, %p309_p5 }
 0x25a   :  { %317 = shalt.err (!%p314_p7)
}
 0x25b   :  { %181 = dma.vmem_to_hbm [thread:$0]  %s179_s1, 128, %s436_s3, [#allocation3]  }
 0x25c   :  { %318 = dma.done.wait [#allocation3], 128  }
 0x25d   :  { %319 = vsyncadd [#allocation3], 4294967168 }
 0x25e   :  { %185 = vsyncpa [#allocation3], 1 }

</bundles_post_ra>
